<compile_context>
chip_gen: v7x
topology: tpu7x:2x2x1
jax: 0.10.0
libtpu: 0.0.40
codegen_flags: <defaults>
</compile_context>

<pallas_src>
import functools
import inspect
import math

import jax
import jax.numpy as jnp
from jax import lax
from jax.experimental import pallas as pl
from jax.experimental.pallas import tpu as pltpu


_HAS_PIPELINE_MODE = (
    hasattr(pl, "Buffered")
    and "pipeline_mode" in inspect.signature(pl.BlockSpec).parameters
)


def _const_spec(shape, index_map):
    """BlockSpec for a grid-invariant block: single-buffered when supported."""
    if _HAS_PIPELINE_MODE:
        try:
            return pl.BlockSpec(shape, index_map, pipeline_mode=pl.Buffered(1))
        except TypeError:
            pass
    return pl.BlockSpec(shape, index_map)


def _vmem_limit_bytes():
    """Scoped VMEM budget per generation (v5e/v6e ~128 MiB phys, v7x 64 MiB)."""
    try:
        phys = pltpu.get_tpu_info().vmem_capacity_bytes
    except Exception:
        phys = 128 * 1024 * 1024
    # ~60% of physical: v5e/v6e -> ~76 MiB, v7x -> ~38 MiB (leave headroom).
    return min(int(phys * 0.6), 96 * 1024 * 1024)


def _tile_candidates(T):
    cands = [c for c in (512, 256, 128) if T % c == 0]
    if not cands:
        if T > 1024:
            raise ValueError(
                f"T={T} is not a multiple of 128; whole-sequence blocks would blow VMEM")
        cands = [T]          # small T: single whole-T block (satisfies (8,128) rule)
    return cands


def _attn_tiles(T, num_heads, vmem_limit):
    """Pick (tq, tkv) so H*tq*tkv*8B (f32 scores + probs) stays under ~1/3 of VMEM."""
    cands = _tile_candidates(T)
    tq = tkv = cands[0]
    budget = vmem_limit // 3
    for c in cands:                       # shrink tq first (keeps MXU N = tkv wide)
        tq = c
        if num_heads * tq * tkv * 8 <= budget:
            break
    for c in cands:
        tkv = c
        if num_heads * tq * tkv * 8 <= budget:
            break
    return tq, tkv


def _proj_tile(T, din, dout, vmem_limit):
    """Cap tr so the projection kernel's working set fits the scoped VMEM limit."""
    cands = _tile_candidates(T)
    for tr in cands:
        need = (2 * tr * din * 2           # x, double-buffered bf16
                + 3 * din * dout * 2       # fused qkv weight, single-buffered bf16
                + 2 * 3 * tr * dout * 2    # q/k/v outputs, double-buffered bf16
                + 2 * 3 * tr * dout * 4)   # f32 matmul result + relayout temps
        if need <= vmem_limit:
            return tr
    return cands[-1]


def qkv_proj_kernel(x_ref, w_ref, q_ref, k_ref, v_ref, *, num_heads, head_dim, dout):
    x = x_ref[0]                                                 # (tr, din) bf16
    tr = x.shape[0]
    # One fused (tr, din) x (din, 3*dout) bf16 MXU pass, f32 accumulation.
    y = jnp.dot(x, w_ref[...], preferred_element_type=jnp.float32)     # (tr, 3*dout)
    q = y[:, :dout].reshape(tr, num_heads, head_dim)
    k = y[:, dout:2 * dout].reshape(tr, num_heads, head_dim)
    v = y[:, 2 * dout:].reshape(tr, num_heads, head_dim)
    # Head split / relayout happens exactly once here (not per KV step).
    q_ref[0] = jnp.transpose(q, (1, 0, 2)).astype(jnp.bfloat16)        # (H, tr, hd)
    # K is stored pre-transposed (H, hd, tr): QK^T then contracts K's sublane dim,
    # so the attention hot loop needs no XLU relayout and K's stores are lane-dense
    # along T (multiple of 128) instead of masked hd-wide stores.
    k_ref[0] = jnp.transpose(k, (1, 2, 0)).astype(jnp.bfloat16)        # (H, hd, tr)
    v_ref[0] = jnp.transpose(v, (1, 0, 2)).astype(jnp.bfloat16)        # (H, tr, hd)


def attn_kernel(q_ref, k_ref, v_ref, wo_ref, bo_ref, o_ref,
                m_sc, l_sc, acc_sc, *, tq, tkv):
    qi = pl.program_id(1)
    ki = pl.program_id(2)
    nk = pl.num_programs(2)

    @pl.when(ki == 0)
    def _():
        m_sc[...] = jnp.full(m_sc.shape, -jnp.inf, dtype=jnp.float32)
        l_sc[...] = jnp.zeros(l_sc.shape, dtype=jnp.float32)
        acc_sc[...] = jnp.zeros(acc_sc.shape, dtype=jnp.float32)

    q_start = qi * tq
    k_start = ki * tkv
    # Tile classification (with tq == tkv: valid <=> ki <= qi, crossing <=> ki == qi).
    is_valid = k_start <= q_start + tq - 1          # tile has >= 1 unmasked element
    crosses = k_start + tkv - 1 > q_start           # tile straddles the diagonal

    def scores():
        # Batched-heads QK^T on the MXU, f32 accumulation. K is pre-transposed
        # (H, hd, tkv), so the contraction is over K's sublane dim (no relayout).
        # NOTE: head_dim < 128 underfills the MXU contraction width; that is the
        # structural ceiling for this matmul, independent of tile size.
        return jnp.einsum('hqd,hdk->hqk', q_ref[0], k_ref[0],
                          preferred_element_type=jnp.float32)          # (H, tq, tkv)

    def online_softmax_update(s):
        m_prev = m_sc[...]
        m_new = jnp.maximum(m_prev, jnp.max(s, axis=-1, keepdims=True))
        alpha = jnp.exp(m_prev - m_new)
        p = jnp.exp(s - m_new)
        l_sc[...] = alpha * l_sc[...] + jnp.sum(p, axis=-1, keepdims=True)
        acc_sc[...] = alpha * acc_sc[...] + jnp.einsum(
            'hqk,hkd->hqd', p.astype(jnp.bfloat16), v_ref[0],
            preferred_element_type=jnp.float32)
        m_sc[...] = m_new
        # TODO(synk): attention-weight dropout (nn.Dropout(0.1)) is identity in eval
        # mode; training would apply pltpu.prng_seed/prng_random_bits to p here.

    # Fast path: fully-below-diagonal tiles (the bulk of processed steady-state steps)
    # pay no mask arithmetic at all.
    @pl.when(jnp.logical_and(is_valid, jnp.logical_not(crosses)))
    def _():
        online_softmax_update(scores())

    # Diagonal-crossing tiles only: single finite additive causal bias. (-1e30, not
    # -inf, keeps exp() NaN-free; this is safe because under causal masking KV tile 0
    # always contains an unmasked key for every query row. Do NOT reuse this kernel
    # with arbitrary masks that could fully mask a row in its first processed tile.)
    @pl.when(jnp.logical_and(is_valid, crosses))
    def _():
        s = scores()
        row = lax.broadcasted_iota(jnp.int32, (tq, tkv), 0) + q_start
        col = lax.broadcasted_iota(jnp.int32, (tq, tkv), 1) + k_start
        s = s + jnp.where(col > row, jnp.float32(-1e30), jnp.float32(0.0))[None]
        online_softmax_update(s)

    @pl.when(ki == nk - 1)
    def _():
        # Normalize with the EUP approximate reciprocal (otherwise-idle slot).
        ctx = acc_sc[...] * pl.reciprocal(l_sc[...], approx=True)      # (H, tq, hd) f32
        num_heads, _, head_dim = ctx.shape
        # One head->lane relayout per q-tile, then a lane-dense (tq, Dout) output slab.
        ctx = jnp.transpose(ctx, (1, 0, 2)).reshape(tq, num_heads * head_dim)
        out = jnp.dot(ctx.astype(jnp.bfloat16), wo_ref[...],
                      preferred_element_type=jnp.float32) + bo_ref[...]
        o_ref[0] = out.astype(o_ref.dtype)


def multi_headed_attention(x, wq, wk, wv, wo, bo, *, num_heads):
    """x: (B, T, Din); wq/wk/wv: (Din, Dout); wo: (Dout, Dout); bo: (1, Dout)."""
    B, T, din = x.shape
    dout = wq.shape[1]
    assert dout % num_heads == 0
    head_dim = dout // num_heads
    out_dtype = x.dtype

    vmem_limit = _vmem_limit_bytes()
    tr = _proj_tile(T, din, dout, vmem_limit)
    tq, tkv = _attn_tiles(T, num_heads, vmem_limit)

    # bf16 MXU operands (f32 accumulation inside the kernels); fold the softmax
    # 1/sqrt(head_dim) scale into W_q once, and fuse the three projection weights
    # into a single (din, 3*dout) matrix for one large-N MXU pass.
    xb = x.astype(jnp.bfloat16)
    wqkv = jnp.concatenate(
        [wq * (1.0 / math.sqrt(head_dim)), wk, wv], axis=1).astype(jnp.bfloat16)
    wob = wo.astype(jnp.bfloat16)
    bof = bo.astype(jnp.float32)

    # ---- kernel 1: fused QKV projection -> head-major bf16 q/v, pre-transposed K ----
    qv_shape = jax.ShapeDtypeStruct((B, num_heads, T, head_dim), jnp.bfloat16)
    kT_shape = jax.ShapeDtypeStruct((B, num_heads, head_dim, T), jnp.bfloat16)
    q, k, v = pl.pallas_call(
        functools.partial(qkv_proj_kernel, num_heads=num_heads,
                          head_dim=head_dim, dout=dout),
        out_shape=(qv_shape, kT_shape, qv_shape),
        grid=(B, T // tr),
        in_specs=[
            pl.BlockSpec((1, tr, din), lambda b, r: (b, r, 0)),
            _const_spec((din, 3 * dout), lambda b, r: (0, 0)),   # single-buffered weight
        ],
        out_specs=(
            pl.BlockSpec((1, num_heads, tr, head_dim), lambda b, r: (b, 0, r, 0)),
            pl.BlockSpec((1, num_heads, head_dim, tr), lambda b, r: (b, 0, 0, r)),
            pl.BlockSpec((1, num_heads, tr, head_dim), lambda b, r: (b, 0, r, 0)),
        ),
        compiler_params=pltpu.CompilerParams(
            dimension_semantics=("parallel", "parallel"),
            vmem_limit_bytes=vmem_limit),
    )(xb, wqkv)

    # ---- kernel 2: flash-style attention + fused output projection ------------------
    # Clamp the K/V block index to the last causally-valid KV tile: above-diagonal
    # grid steps then revisit the previous block index and Pallas elides their fetch.
    def kv_block(qi, ki):
        return jnp.minimum(ki, (qi * tq + tq - 1) // tkv)

    return pl.pallas_call(
        functools.partial(attn_kernel, tq=tq, tkv=tkv),
        out_shape=jax.ShapeDtypeStruct((B, T, dout), out_dtype),
        grid=(B, T // tq, T // tkv),            # KV (reduction) axis last
        in_specs=[
            pl.BlockSpec((1, num_heads, tq, head_dim),
                         lambda b, qi, ki: (b, 0, qi, 0)),
            pl.BlockSpec((1, num_heads, head_dim, tkv),
                         lambda b, qi, ki: (b, 0, 0, kv_block(qi, ki))),
            pl.BlockSpec((1, num_heads, tkv, head_dim),
                         lambda b, qi, ki: (b, 0, kv_block(qi, ki), 0)),
            _const_spec((dout, dout), lambda b, qi, ki: (0, 0)),   # single-buffered W_o
            _const_spec((1, dout), lambda b, qi, ki: (0, 0)),      # single-buffered b_o
        ],
        out_specs=pl.BlockSpec((1, tq, dout), lambda b, qi, ki: (b, qi, 0)),
        scratch_shapes=[
            pltpu.VMEM((num_heads, tq, 1), jnp.float32),           # m: running max
            pltpu.VMEM((num_heads, tq, 1), jnp.float32),           # l: running denom
            pltpu.VMEM((num_heads, tq, head_dim), jnp.float32),    # acc: running context
        ],
        compiler_params=pltpu.CompilerParams(
            dimension_semantics=("parallel", "parallel", "arbitrary"),
            vmem_limit_bytes=vmem_limit),
    )(q, k, v, wob, bof)


def reference_mha(x, wq, wk, wv, wo, bo, *, num_heads):
    """Plain-JAX f32 reference matching the PyTorch forward (eval mode)."""
    B, T, din = x.shape
    dout = wq.shape[1]
    hd = dout // num_heads
    q = (x @ wq).reshape(B, T, num_heads, hd).transpose(0, 2, 1, 3)
    k = (x @ wk).reshape(B, T, num_heads, hd).transpose(0, 2, 1, 3)
    v = (x @ wv).reshape(B, T, num_heads, hd).transpose(0, 2, 1, 3)
    scores = jnp.einsum("bhqd,bhkd->bhqk", q, k)
    mask = jnp.triu(jnp.ones((T, T), dtype=bool), k=1)
    scores = jnp.where(mask, -jnp.inf, scores)
    w = jax.nn.softmax(scores / math.sqrt(hd), axis=-1)
    ctx = jnp.einsum("bhqk,bhkd->bhqd", w, v).transpose(0, 2, 1, 3).reshape(B, T, dout)
    return ctx @ wo + bo


if __name__ == "__main__":
    # Small shapes consistent with the module's forward: x is (batch, seq, din).
    B, T = 2, 8
    din, dout, num_heads = 32, 32, 4

    key = jax.random.PRNGKey(0)
    kx, kq, kk, kv, ko, kb = jax.random.split(key, 6)

    x = jax.random.normal(kx, (B, T, din), dtype=jnp.float32)

    # nn.Linear(din, dout, bias=False) weights, stored pre-transposed as (din, dout).
    scale_in = 1.0 / math.sqrt(din)
    wq = jax.random.uniform(kq, (din, dout), jnp.float32, -scale_in, scale_in)
    wk = jax.random.uniform(kk, (din, dout), jnp.float32, -scale_in, scale_in)
    wv = jax.random.uniform(kv, (din, dout), jnp.float32, -scale_in, scale_in)
    # out_proj: nn.Linear(dout, dout) with bias (kept 2D (1, dout) for TPU layout).
    scale_out = 1.0 / math.sqrt(dout)
    wo = jax.random.uniform(ko, (dout, dout), jnp.float32, -scale_out, scale_out)
    bo = jax.random.uniform(kb, (1, dout), jnp.float32, -scale_out, scale_out)

    out = multi_headed_attention(x, wq, wk, wv, wo, bo, num_heads=num_heads)
    out = jax.block_until_ready(out)

    ref = reference_mha(x, wq, wk, wv, wo, bo, num_heads=num_heads)
    assert out.shape == (B, T, dout)
    # bf16 MXU operands vs f32 reference -> relaxed tolerance (do not tighten without
    # revisiting the bf16 casts of p and the pre-scaled W_q).
    assert jnp.allclose(out, ref, atol=5e-2, rtol=5e-2), "mismatch vs reference"

    print("KERNEL_OK")
</pallas_src>

<mosaic_0001>
module attributes {stable_mosaic.version = 11 : i64} {
  func.func @qkv_proj_kernel(%arg0: i32, %arg1: i32, %arg2: memref<1x8x32xbf16, #tpu.memory_space<vmem>>, %arg3: memref<32x96xbf16, #tpu.memory_space<vmem>>, %arg4: memref<1x4x8x8xbf16, #tpu.memory_space<vmem>>, %arg5: memref<1x4x8x8xbf16, #tpu.memory_space<vmem>>, %arg6: memref<1x4x8x8xbf16, #tpu.memory_space<vmem>>) attributes {dimension_semantics = [#tpu.dimension_semantics<parallel>, #tpu.dimension_semantics<parallel>], iteration_bounds = array<i64: 2, 1>, scalar_prefetch = 0 : i64, scratch_operands = 0 : i64, tpu.core_type = #tpu.core_type<tc>, window_params = [{transform_indices = @transform_0, window_bounds = array<i64: 1, 8, 32>}, {pipeline_mode = #tpu.pipeline_mode<synchronous>, transform_indices = @transform_1, window_bounds = array<i64: 32, 96>}, {transform_indices = @transform_2, window_bounds = array<i64: 1, 4, 8, 8>}, {transform_indices = @transform_3, window_bounds = array<i64: 1, 4, 8, 8>}, {transform_indices = @transform_4, window_bounds = array<i64: 1, 4, 8, 8>}]} {
    %c0 = arith.constant 0 : index
    %c0_0 = arith.constant 0 : index
    %c0_1 = arith.constant 0 : index
    %0 = vector.load %arg2[%c0, %c0_0, %c0_1] : memref<1x8x32xbf16, #tpu.memory_space<vmem>>, vector<1x8x32xbf16>
    %1 = vector.shape_cast %0 : vector<1x8x32xbf16> to vector<8x32xbf16>
    %c0_2 = arith.constant 0 : index
    %c0_3 = arith.constant 0 : index
    %2 = vector.load %arg3[%c0_2, %c0_3] : memref<32x96xbf16, #tpu.memory_space<vmem>>, vector<32x96xbf16>
    %cst = arith.constant dense<0.000000e+00> : vector<8x96xf32>
    %3 = tpu.matmul %1, %2, %cst {dimension_numbers = #tpu.dot_dimension_numbers<[1], [0], [0], [1], [0, 0, 1, 1], [], []>} : vector<8x32xbf16>, vector<32x96xbf16>, vector<8x96xf32> -> vector<8x96xf32>
    %4 = vector.extract_strided_slice %3 {offsets = [0, 0], sizes = [8, 32], strides = [1, 1]} : vector<8x96xf32> to vector<8x32xf32>
    %5 = vector.shape_cast %4 : vector<8x32xf32> to vector<8x4x8xf32>
    %6 = vector.extract_strided_slice %3 {offsets = [0, 32], sizes = [8, 32], strides = [1, 1]} : vector<8x96xf32> to vector<8x32xf32>
    %7 = vector.shape_cast %6 : vector<8x32xf32> to vector<8x4x8xf32>
    %8 = vector.extract_strided_slice %3 {offsets = [0, 64], sizes = [8, 32], strides = [1, 1]} : vector<8x96xf32> to vector<8x32xf32>
    %9 = vector.shape_cast %8 : vector<8x32xf32> to vector<8x4x8xf32>
    %10 = tpu.transpose %5, [1, 0, 2] : vector<8x4x8xf32> -> vector<4x8x8xf32>
    %11 = arith.truncf %10 : vector<4x8x8xf32> to vector<4x8x8xbf16>
    %c0_4 = arith.constant 0 : index
    %c0_5 = arith.constant 0 : index
    %c0_6 = arith.constant 0 : index
    %c0_7 = arith.constant 0 : index
    %12 = vector.load %arg4[%c0_4, %c0_5, %c0_6, %c0_7] : memref<1x4x8x8xbf16, #tpu.memory_space<vmem>>, vector<1x4x8x8xbf16>
    %13 = vector.shape_cast %12 : vector<1x4x8x8xbf16> to vector<4x8x8xbf16>
    %14 = vector.shape_cast %11 : vector<4x8x8xbf16> to vector<1x4x8x8xbf16>
    tpu.vector_store %arg4[%c0_4, %c0_5, %c0_6, %c0_7], %14 {strides = array<i32>} : memref<1x4x8x8xbf16, #tpu.memory_space<vmem>>, vector<1x4x8x8xbf16>,
    %15 = tpu.transpose %7, [1, 2, 0] : vector<8x4x8xf32> -> vector<4x8x8xf32>
    %16 = arith.truncf %15 : vector<4x8x8xf32> to vector<4x8x8xbf16>
    %c0_8 = arith.constant 0 : index
    %c0_9 = arith.constant 0 : index
    %c0_10 = arith.constant 0 : index
    %c0_11 = arith.constant 0 : index
    %17 = vector.load %arg5[%c0_8, %c0_9, %c0_10, %c0_11] : memref<1x4x8x8xbf16, #tpu.memory_space<vmem>>, vector<1x4x8x8xbf16>
    %18 = vector.shape_cast %17 : vector<1x4x8x8xbf16> to vector<4x8x8xbf16>
    %19 = vector.shape_cast %16 : vector<4x8x8xbf16> to vector<1x4x8x8xbf16>
    tpu.vector_store %arg5[%c0_8, %c0_9, %c0_10, %c0_11], %19 {strides = array<i32>} : memref<1x4x8x8xbf16, #tpu.memory_space<vmem>>, vector<1x4x8x8xbf16>,
    %20 = tpu.transpose %9, [1, 0, 2] : vector<8x4x8xf32> -> vector<4x8x8xf32>
    %21 = arith.truncf %20 : vector<4x8x8xf32> to vector<4x8x8xbf16>
    %c0_12 = arith.constant 0 : index
    %c0_13 = arith.constant 0 : index
    %c0_14 = arith.constant 0 : index
    %c0_15 = arith.constant 0 : index
    %22 = vector.load %arg6[%c0_12, %c0_13, %c0_14, %c0_15] : memref<1x4x8x8xbf16, #tpu.memory_space<vmem>>, vector<1x4x8x8xbf16>
    %23 = vector.shape_cast %22 : vector<1x4x8x8xbf16> to vector<4x8x8xbf16>
    %24 = vector.shape_cast %21 : vector<4x8x8xbf16> to vector<1x4x8x8xbf16>
    tpu.vector_store %arg6[%c0_12, %c0_13, %c0_14, %c0_15], %24 {strides = array<i32>} : memref<1x4x8x8xbf16, #tpu.memory_space<vmem>>, vector<1x4x8x8xbf16>,
    return
  }
  func.func @transform_0(%arg0: i32, %arg1: i32) -> (i32, i32, i32) {
    %c0_i32 = arith.constant 0 : i32
    %c0_i32_0 = arith.constant 0 : i32
    return %arg0, %arg1, %c0_i32 : i32, i32, i32
  }
  func.func @transform_1(%arg0: i32, %arg1: i32) -> (i32, i32) {
    %c0_i32 = arith.constant 0 : i32
    %c0_i32_0 = arith.constant 0 : i32
    %c0_i32_1 = arith.constant 0 : i32
    return %c0_i32, %c0_i32_0 : i32, i32
  }
  func.func @transform_2(%arg0: i32, %arg1: i32) -> (i32, i32, i32, i32) {
    %c0_i32 = arith.constant 0 : i32
    %c0_i32_0 = arith.constant 0 : i32
    %c0_i32_1 = arith.constant 0 : i32
    return %arg0, %c0_i32, %arg1, %c0_i32_0 : i32, i32, i32, i32
  }
  func.func @transform_3(%arg0: i32, %arg1: i32) -> (i32, i32, i32, i32) {
    %c0_i32 = arith.constant 0 : i32
    %c0_i32_0 = arith.constant 0 : i32
    %c0_i32_1 = arith.constant 0 : i32
    return %arg0, %c0_i32, %c0_i32_0, %arg1 : i32, i32, i32, i32
  }
  func.func @transform_4(%arg0: i32, %arg1: i32) -> (i32, i32, i32, i32) {
    %c0_i32 = arith.constant 0 : i32
    %c0_i32_0 = arith.constant 0 : i32
    %c0_i32_1 = arith.constant 0 : i32
    return %arg0, %c0_i32, %arg1, %c0_i32_0 : i32, i32, i32, i32
  }
}

</mosaic_0001>

<bundles_post_ra>
// kernel: tpu_custom_call.1
= control target key start
LH: loop header
LB: loop body
LE: loop exit
PB: predicated region body
PF: predicated region fallthrough
CT: control target
= control target key end

     0   :  { %10 = vsyncpa [#allocation3], 0  ;;  %s2476_s0 = inlined_call_operand.hbm [shape: bf16[2,8,32], index: 0, kind: input, shape index: {}]   ;;  %s2477_s1 = inlined_call_operand.hbm [shape: bf16[32,96], index: 1, kind: input, shape index: {}]   ;;  %s2478_s2 = inlined_call_operand.hbm [shape: bf16[2,4,8,8], index: 2, kind: output, shape index: {0}]   ;;  %s2479_s3 = inlined_call_operand.hbm [shape: bf16[2,4,8,8], index: 3, kind: output, shape index: {1}]   ;;  %s2480_s4 = inlined_call_operand.hbm [shape: bf16[2,4,8,8], index: 4, kind: output, shape index: {2}]  }
   0x1   :  { %12 = vsyncpa [#allocation3 + $0x1], 0 }
   0x2   :  { %13 = vsyncpa [#allocation6], 0 }
   0x3   :  { %14 = vsyncpa [#allocation4], 0 }
   0x4   :  { %16 = vsyncpa [#allocation4 + $0x1], 0 }
   0x5   :  { %17 = vsyncpa [#allocation9], 0 }
   0x6   :  { %19 = vsyncpa [#allocation9 + $0x1], 0  ;;  %s2052_s15 = smov 0   ;;  %s2054_s16 = smov 0  }
   0x7   :  { %s2056_s17 = smov 0   ;;  %s2058_s18 = smov 0  }
   0x8   :  { %s2060_s19 = smov 0   ;;  %s2062_s20 = smov 0  }
   0x9 LB: > { %s2083_s21 = sadd.s32 4294967295, %s2008_s20   ;;  %s1663_s22 = sadd.s32 4294967294, %s2008_s20   ;;  %s2008_s20 = sphi %s2062_s20, %s25_s20   ;;  %s2004_s19 = sphi %s2060_s19, %s2502_s19   ;;  %s2000_s18 = sphi %s2058_s18, %s2501_s18   ;;  %s1996_s17 = sphi %s2056_s17, %s2500_s17   ;;  %s1992_s16 = sphi %s2054_s16, %s2499_s16   ;;  %s1988_s15 = sphi %s2052_s15, %s2498_s15  }
   0xa   : > { %p59_p0 = scmp.ne.s32.totalorder %s1992_s16, %s1988_s15  ;;  %p2481_p1 = scmp.eq.s32.totalorder %s2083_s21, 0 }
   0xb   : > { %p112_p3 = scmp.eq.s32.totalorder %s1663_s22, 1  ;;  %p1664_p5 = scmp.ge.s32.totalorder %s2008_s20, 1 }
   0xc   : > { %p2094_p4 = por %p2481_p1, %p59_p0  ;;  %p175_p7 = scmp.lt.s32.totalorder %s2008_s20, 3 }
   0xd   : > { %p2099_p6 = por %p112_p3, %p59_p0  ;;  %s2010_s26 = smov [#allocation5]  }
   0xe   : > { %s2484_s23 = scalar_select %p2094_p4, 1, 0 }
   0xf   : > { %s2485_s24 = scalar_select %p2099_p6, 1, 0 }
  0x10   : > { %p2104_p8 = pnand %p1664_p5, %p175_p7  ;;  %s187_s27 = sshll.u32 %s2010_s26, 4  ;;  %s188_s27 = int_to_ptr.vmem [resolvable:$true] %s187_s27 }
  0x11   : > { %s37_s29 = sadd.s32 1, %s2004_s19  ;;  %s1804_s6 = scalar_lea.hbm %s2477_s1, 256 }
  0x12   : > { %s2486_s25 = scalar_select %p2104_p8, 1, 0 }
  0x13   : > { %p1719_p9 = pneg %p2104_p8  ;;  %p1805_p12 = scmp.ne.s32.totalorder %s2477_s1, %s1804_s6 }
  0x14   : > { %p1811_p5 = scmp.lt.u32.totalorder %s1804_s6, %s2477_s1 }
  0x15   : > { %p2113_p11 = pnand %p1719_p9, %p2481_p1 }
  0x17   : > { %p1806_p13 = pneg %p2113_p11 }
  0x19   : > { %p1807_p0 = pnand %p1806_p13, %p1805_p12 }
  0x1b   : > { %p1808_p3 = pneg %p1807_p0 }
  0x1d   : > { %p1813_p7 = pnand %p1811_p5, %p1808_p3 }
  0x1f   : > { %1816 = shalt.err (!%p1813_p7)
}
  0x20   : > { %s1817_s11 = scalar_lea.vmem %s188_s27, 256  ;;  %p1825_p2 = scmp.lt.s32.totalorder %s188_s27, %s188_s27 }
  0x21   : > { %p1818_p9 = scmp.ne.s32.totalorder %s188_s27, %s1817_s11  ;;  %p1826_p6 = scmp.lt.s32.totalorder %s1817_s11, %s1817_s11 }
  0x23   : > { %p1820_p10 = pnand %p1818_p9, %p1806_p13  ;;  %p1827_p4 = por %p1826_p6, %p1825_p2 }
  0x25   : > { %p1821_p1 = pneg %p1820_p10 }
  0x27   : > { %p1828_p8 = pnand %p1827_p4, %p1821_p1 }
  0x29   : > { %1831 = shalt.err (!%p1828_p8)
}
  0x2a   : > { %s2011_s12 = smov 64   ;;  %s2012_s13 = smov 4  }
  0x2b   : > { %1722 = dma.hbm_to_vmem [thread:$0]  (!%p2113_p11), %s2477_s1, 256, %s188_s27, [#allocation6], %s2011_s12, %s2011_s12, %s2012_s13  }
  0x2c   : > { %p39_p1 = scmp.ge.s32.totalorder %s37_s29, 2  ;;  %s46_s30 = sadd.s32 1, %s1996_s17 }
  0x2d   : > { %p53_p2 = scmp.ne.s32.totalorder %s1996_s17, %s1992_s16  ;;  %p54_p4 = scmp.eq.s32.totalorder %s2008_s20, 0 }
  0x2e   : > { %s2504_s29 = smov (%p39_p1, %s37_s29), 0  ;;  %p2489_p8 = scmp.eq.s32.totalorder %s2083_s21, 1 }
  0x2f   : > { %p2140_p6 = por %p54_p4, %p53_p2  ;;  %s41_s28 = ssub.s32 %s2004_s19, %s2504_s29 }
  0x30   : > { %p2146_p10 = por %p2489_p8, %p53_p2  ;;  %p1738_p12 = scmp.lt.s32.totalorder %s2008_s20, 2 }
  0x31   : > { %p44_p11 = scmp.eq.s32.totalorder %s41_s28, 0  ;;  %s201_s27 = sand.u32 1, %s1996_s17  }
  0x32   : > { %s1667_s7 = sshll.u32 %s201_s27, 2  ;;  %s1668_s9 = sshll.u32 %s2004_s19, 6 }
  0x33   : > { %s2155_s8 = scalar_select %p44_p11, %s1996_s17, %s46_s30  }
  0x34   : > { %s2161_s12 = scalar_lea.hbm %s2476_s0, %s1668_s9  ;;  %s205_s13 = scalar_lea.vmem [#allocation2], %s1667_s7 }
  0x35   : > { %s213_s14 = sshll.u32 %s205_s13, 4  ;;  %p2167_p13 = pnand %p1738_p12, %p2140_p6  ;;  %s2163_s14 = int_to_ptr.vmem [resolvable:$true] %s213_s14 }
  0x36   : > { %s202_s30 = scalar_lea.sflag [#allocation3], %s201_s27  ;;  %s1832_s28 = scalar_lea.hbm %s2161_s12, 64 }
  0x37   : > { %p1833_p0 = scmp.ne.s32.totalorder %s2161_s12, %s1832_s28  ;;  %p1834_p3 = pneg %p2167_p13 }
  0x38   : > { %s1837_s10 = scalar_lea.hbm %s2476_s0, 128  ;;  %p1838_p9 = scmp.lt.u32.totalorder %s2161_s12, %s2476_s0 }
  0x39   : > { %p1835_p5 = pnand %p1834_p3, %p1833_p0  ;;  %p1839_p1 = scmp.lt.u32.totalorder %s1837_s10, %s1832_s28 }
  0x3a   : > { %p1841_p4 = scmp.lt.u32.totalorder %s1832_s28, %s2161_s12 }
  0x3b   : > { %p1836_p7 = pneg %p1835_p5  ;;  %p1840_p2 = por %p1839_p1, %p1838_p9 }
  0x3d   : > { %p1842_p6 = por %p1841_p4, %p1840_p2 }
  0x3f   : > { %p1843_p8 = pnand %p1842_p6, %p1836_p7 }
  0x41   : > { %1846 = shalt.err (!%p1843_p8)
}
  0x42   : > { %s1847_s27 = scalar_lea.vmem %s2163_s14, 64  ;;  %s2013_s13 = smov [#allocation2]  }
  0x43   : > { %p1848_p12 = scmp.ne.s32.totalorder %s2163_s14, %s1847_s27  ;;  %s1852_s7 = sshll.u32 %s2013_s13, 4  ;;  %s1853_s7 = int_to_ptr.vmem [resolvable:$false] %s1852_s7 }
  0x44   : > { %s1854_s9 = scalar_lea.vmem %s1853_s7, 128  ;;  %p1855_p5 = scmp.lt.s32.totalorder %s2163_s14, %s1853_s7 }
  0x45   : > { %p1850_p11 = pnand %p1848_p12, %p1834_p3  ;;  %p1856_p9 = scmp.lt.s32.totalorder %s1854_s9, %s1847_s27 }
  0x47   : > { %p1851_p0 = pneg %p1850_p11  ;;  %p1857_p1 = por %p1856_p9, %p1855_p5 }
  0x49   : > { %p1858_p2 = pnand %p1857_p1, %p1851_p0 }
  0x4b   : > { %1861 = shalt.err (!%p1858_p2)
}
  0x4c   : > { %1726 = dma.hbm_to_vmem [thread:$0]  (!%p2167_p13), %s2161_s12, 64, %s2163_s14, %s202_s30  }
  0x4d   : > { %p2492_p7 = scmp.ne.s32.totalorder %s2486_s25, 0 }
  0x4e   : > { %s2199_s28 = sand.u32 (!%p2492_p7), 1, %s1992_s16   ;;  %p2493_p3 = scmp.ne.s32.totalorder (!%p2492_p7), %s2484_s23, 0 }
  0x4f   : > { %222 = sbr.rel (%p2492_p7) target bundleno = 902 (0x386), region = 28  ;;  %s1670_s10 = sshll.u32 (!%p2492_p7), %s2199_s28, 2 }
  0x50   : > { %s225_s5 = scalar_lea.sflag (!%p2492_p7), [#allocation3], %s2199_s28  ;;  %s228_s11 = scalar_lea.vmem (!%p2492_p7), [#allocation2], %s1670_s10 }
  0x56   : > { %1971 = dma.done.wait (%p2493_p3), %s225_s5, 64  }
  0x57   : > { %1973 = vsyncadd (%p2493_p3), %s225_s5, 4294967232  ;;  %p2494_p4 = scmp.eq.s32.totalorder %s2083_s21, 0 }
  0x59   : > { %1975 = dma.done.wait (%p2494_p4), [#allocation6], 256   ;;  %p2495_p13 = pmov %p2494_p4 }
  0x5a   : > { %v2014_v0 = vmov 0.0   ;;  %vm2015_vm0 = vmmov 0   ;;  %v1802_v1 = vld [vmem:[#allocation5] sm:$0xff]   ;;  %v1803_v2 = vld [vmem:[#allocation5 + $0x8] sm:$0xff]   ;;  %v268_v3 = vld [vmem:[%s228_s11] sm:$0xf]  ;;  %v344_v10 = vlaneseq }
  0x5b   : > { %1977 = vsyncadd (%p2495_p13), [#allocation6], 4294967040  ;;  %1699 = vmatprep.subr.bf16.mxu0 %v2014_v0  ;;  %1703 = vmatprep.mubr.msk.bf16.mxu0 %vm2015_vm0, %v2014_v0  ;;  %vm285_vm1 = vcmask 261120   ;;  %s2016_s23 = smov 104   ;;  %s2017_s25 = smov 120   ;;  %vm639_vm2 = vcmask 60416  }
  0x5c   : > { %1700 = vmatpush3.bf16.msra.mxu0 %v1802_v1  ;;  %s2018_s12 = smov 96   ;;  %s2019_s14 = smov 112   ;;  %v2021_v8 = vmov 1983009808   ;;  %v2022_v11 = vmov 1934713408  }
  0x5d   : > { %1701 = vmatprep.subr.bf16.mxu0 %v2014_v0  ;;  %s2020_s26 = smov 64   ;;  %v342_v9 = vunpack.c.l.s4 %v2021_v8  ;;  %v374_v12 = vunpack.c.l.s4 %v2022_v11  ;;  %v345_v14 = vshrl.u32 %v344_v10, 7  ;;  %s2251_s30 = sshll.u32 %s2199_s28, 4 }
  0x5e   : > { %s2254_s27 = scalar_lea.vmem [#allocation7], %s2251_s30  ;;  %s2315_s13 = sshll.u32 %s2000_s18, 8 }
  0x5f   : > { %v343_v13 = vunpack.c.0.s8 %v342_v9  ;;  %v375_v17 = vunpack.c.0.s8 %v374_v12  ;;  %s2325_s18 = scalar_lea.hbm %s2478_s2, %s2315_s13  ;;  %s1469_s10 = sshll.u32 %s2254_s27, 4  ;;  %s2328_s10 = int_to_ptr.vmem [resolvable:$true] %s1469_s10 }
  0x60   : > { %1702 = vmatpush3.bf16.msra.mxu0 %v1803_v2  ;;  %s1445_s5 = scalar_lea.sflag [#allocation4], %s2199_s28  ;;  %s1862_s11 = scalar_lea.vmem %s2328_s10, 256 }
  0x61   : > { %v2220_v18 = vsub.s32 %v343_v13, %v345_v14  ;;  %v2232_v24 = vsub.s32 %v375_v17, %v345_v14  ;;  %p1863_p6 = scmp.ne.s32.totalorder %s2328_s10, %s1862_s11 }
  0x63   : > { %1704 = vmatmul.mubr.msk.bf16.vlgmr.msra.gmra.mrb[0].mxu0 %vm285_vm1, %v268_v3  ;;  %p1864_p8 = pnand %p1863_p6, %p2146_p10 }
  0x65   : > { %p1865_p12 = pneg %p1864_p8 }
 0x136   : > { %v323_v4 = vpop.f32.mrb[0].mxu0 }
 0x137   : > { %336 = vrot.lane.b32.xlu1 %v323_v4, %s2016_s23  ;;  %330 = vrot.lane.b32.xlu0 %v323_v4, %s2017_s25  ;;  %v1705_v5 = vpop.f32.mrb[1].mxu0  ;;  %s2023_s23 = smov [#allocation7]  }
 0x138   : > { %v326_v6 = vpop.f32.mrb[2].mxu0  ;;  %s1866_s25 = sshll.u32 %s2023_s23, 4  ;;  %s1867_s25 = int_to_ptr.vmem [resolvable:$false] %s1866_s25 }
 0x139   : > { %v1706_v7 = vpop.f32.mrb[3].mxu0  ;;  %p1869_p11 = scmp.lt.s32.totalorder %s2328_s10, %s1867_s25 }
 0x13b   : > { %407 = vrot.lane.b32.xlu1 %v323_v4, %s2018_s12  ;;  %333 = vrot.lane.b32.xlu0 %v323_v4, %s2019_s14 }
 0x13f   : > { %487 = vrot.lane.b32.xlu1 %v323_v4, %s2020_s26 }
 0x1a9   : > { %v2215_v15 = vpop.permute.xlu1 %336  ;;  %v2217_v16 = vpop.permute.xlu0 %330 }
 0x1aa   : > { %409 = vrot.lane.b32.xlu0 %v2217_v16, %s2018_s12  ;;  %v355_v19 = vcombine.low %v2217_v16, %v2215_v15  ;;  %v356_v20 = vcombine.high %v2217_v16, %v2215_v15 }
 0x1ac   : > { %v363_v25 = vrot.slane %v355_v19, %v2220_v18  ;;  %v370_v26 = vrot.slane %v356_v20, %v2220_v18 }
 0x1ad   : > { %v2226_v21 = vpop.permute.xlu0 %333  ;;  %v408_v61 = vpop.permute.xlu1 %407 }
 0x1ae   : > { %v339_v22 = vcombine.low %v323_v4, %v2226_v21  ;;  %v340_v23 = vcombine.high %v323_v4, %v2226_v21  ;;  %413 = vrot.lane.b32.xlu0 %v2215_v15, %s2018_s12  ;;  %411 = vrot.lane.b32.xlu1 %v2226_v21, %s2018_s12  ;;  %s1868_s12 = scalar_lea.vmem %s1867_s25, 512 }
 0x1af   : > { %p1870_p0 = scmp.lt.s32.totalorder %s1868_s12, %s1862_s11 }
 0x1b0   : > { %v347_v27 = vrot.slane %v339_v22, %v2220_v18  ;;  %v354_v28 = vrot.slane %v340_v23, %v2220_v18 }
 0x1b1   : > { %v2264_v62 = vpop.permute.xlu1 %487  ;;  %p1871_p5 = por %p1870_p0, %p1869_p11 }
 0x1b2   : > { %v371_v29 = vcombine.low %v347_v27, %v363_v25  ;;  %v372_v30 = vcombine.high %v347_v27, %v363_v25  ;;  %v387_v31 = vcombine.low %v354_v28, %v370_v26  ;;  %v388_v32 = vcombine.high %v354_v28, %v370_v26 }
 0x1b3   : > { %p1872_p9 = pnand %p1871_p5, %p1865_p12 }
 0x1b4   : > { %v379_v33 = vrot.slane %v371_v29, %v2232_v24  ;;  %v386_v34 = vrot.slane %v372_v30, %v2232_v24  ;;  %v395_v35 = vrot.slane %v387_v31, %v2232_v24  ;;  %v402_v36 = vrot.slane %v388_v32, %v2232_v24 }
 0x1b6   : > { %v567_v37 = vcombine.low %v379_v33, %v386_v34  ;;  %v1678_v38 = vcombine.high %v379_v33, %v386_v34  ;;  %v583_v39 = vcombine.low %v395_v35, %v402_v36  ;;  %v1679_v40 = vcombine.high %v395_v35, %v402_v36 }
 0x1b8   : > { %v574_v41 = vrot.slane %v567_v37, %v2220_v18  ;;  %v582_v42 = vrot.slane %v1678_v38, %v2220_v18  ;;  %v590_v43 = vrot.slane %v583_v39, %v2220_v18  ;;  %v598_v44 = vrot.slane %v1679_v40, %v2220_v18 }
 0x1ba   : > { %v599_v45 = vcombine.low %v574_v41, %v582_v42  ;;  %v600_v46 = vcombine.high %v574_v41, %v582_v42  ;;  %v615_v47 = vcombine.low %v590_v43, %v598_v44  ;;  %v616_v48 = vcombine.high %v590_v43, %v598_v44 }
 0x1bc   : > { %v607_v49 = vrot.slane %v599_v45, %v2232_v24  ;;  %v614_v50 = vrot.slane %v600_v46, %v2232_v24  ;;  %v623_v51 = vrot.slane %v615_v47, %v2232_v24  ;;  %v630_v52 = vrot.slane %v616_v48, %v2232_v24 }
 0x1be   : > { %v631_v53 = vcombine.low %v607_v49, %v623_v51  ;;  %v632_v54 = vcombine.high %v607_v49, %v623_v51  ;;  %v633_v55 = vcombine.low %v614_v50, %v630_v52  ;;  %v634_v56 = vcombine.high %v614_v50, %v630_v52 }
 0x1c0   : > { %v635_v57 = vpack.c.bf16 %v631_v53, %v631_v53  ;;  %v636_v58 = vpack.c.bf16 %v632_v54, %v632_v54  ;;  %v637_v59 = vpack.c.bf16 %v633_v55, %v633_v55  ;;  %v638_v60 = vpack.c.bf16 %v634_v56, %v634_v56 }
 0x1c2   : > { %640 = vst.msk [vmem:[%s2254_s27] sm:$0xf] %vm639_vm2, %v635_v57  ;;  %641 = vst.msk [vmem:[%s2254_s27 + $0x4] sm:$0xf] %vm639_vm2, %v636_v58 }
 0x1c3   : > { %642 = vst.msk [vmem:[%s2254_s27 + $0x8] sm:$0xf] %vm639_vm2, %v637_v59  ;;  %643 = vst.msk [vmem:[%s2254_s27 + $0xc] sm:$0xf] %vm639_vm2, %v638_v60 }
 0x21c   : > { %v410_v63 = vpop.permute.xlu0 %409 }
 0x220   : > { %v412_v1 = vpop.permute.xlu1 %411  ;;  %v414_v2 = vpop.permute.xlu0 %413 }
 0x221   : > { %v419_v3 = vcombine.low %v408_v61, %v412_v1  ;;  %v420_v4 = vcombine.high %v408_v61, %v412_v1  ;;  %v435_v5 = vcombine.low %v410_v63, %v414_v2  ;;  %v436_v6 = vcombine.high %v410_v63, %v414_v2 }
 0x223   : > { %v427_v7 = vrot.slane %v419_v3, %v2220_v18  ;;  %v434_v8 = vrot.slane %v420_v4, %v2220_v18  ;;  %v443_v9 = vrot.slane %v435_v5, %v2220_v18  ;;  %v450_v10 = vrot.slane %v436_v6, %v2220_v18 }
 0x225   : > { %v452_v11 = vcombine.high %v427_v7, %v443_v9  ;;  %v451_v12 = vcombine.low %v427_v7, %v443_v9  ;;  %v467_v17 = vcombine.low %v434_v8, %v450_v10  ;;  %v468_v22 = vcombine.high %v434_v8, %v450_v10 }
 0x227   : > { %v466_v13 = vrot.slane %v452_v11, %v2232_v24  ;;  %v459_v14 = vrot.slane %v451_v12, %v2232_v24  ;;  %v475_v19 = vrot.slane %v467_v17, %v2232_v24  ;;  %v482_v23 = vrot.slane %v468_v22, %v2232_v24 }
 0x229   : > { %708 = vxpose.xlu0.b32.start.end [1/1] (short) (narrow) %v466_v13, 8  ;;  %644 = vxpose.xlu1.b32.start.end [1/1] (short) (narrow) %v459_v14, 8  ;;  %v483_v20 = vcombine.high %v459_v14, %v2014_v0  ;;  %v484_v25 = vcombine.high %v466_v13, %v2014_v0  ;;  %v485_v26 = vcombine.high %v475_v19, %v2014_v0 }
 0x22a   : > { %v486_v27 = vcombine.high %v482_v23, %v2014_v0 }
 0x22d   : > { %772 = vxpose.xlu1.b32.start.end [1/1] (short) (narrow) %v475_v19, 8  ;;  %676 = vxpose.xlu0.b32.start.end [1/1] (short) (narrow) %v483_v20, 8 }
 0x231   : > { %836 = vxpose.xlu1.b32.start.end [1/1] (short) (narrow) %v482_v23, 8  ;;  %740 = vxpose.xlu0.b32.start.end [1/1] (short) (narrow) %v484_v25, 8 }
 0x235   : > { %804 = vxpose.xlu0.b32.start.end [1/1] (short) (narrow) %v485_v26, 8 }
 0x239   : > { %868 = vxpose.xlu0.b32.start.end [1/1] (short) (narrow) %v486_v27, 8 }
 0x24f   : > { %491 = vrot.lane.b32.xlu1 %v2226_v21, %s2020_s26 }
 0x253   : > { %493 = vrot.lane.b32.xlu1 %v2215_v15, %s2020_s26 }
 0x262   : > { %489 = vrot.lane.b32.xlu0 %v2217_v16, %s2020_s26 }
 0x2a9   : > { %v724_v28 = vpop.trf.xlu0  ;;  %v660_v29 = vpop.trf.xlu1 }
 0x2aa   : > { %v900_v36 = vcombine.low %v660_v29, %v724_v28  ;;  %v901_v40 = vcombine.high %v660_v29, %v724_v28 }
 0x2ac   : > { %v908_v15 = vrot.slane %v900_v36, %v2220_v18  ;;  %v915_v48 = vrot.slane %v901_v40, %v2220_v18 }
 0x2ad   : > { %v692_v30 = vpop.trf.xlu0  ;;  %v788_v31 = vpop.trf.xlu1 }
 0x2b1   : > { %v756_v32 = vpop.trf.xlu0  ;;  %v852_v34 = vpop.trf.xlu1 }
 0x2b2   : > { %v916_v33 = vcombine.low %v692_v30, %v756_v32  ;;  %v917_v0 = vcombine.high %v692_v30, %v756_v32  ;;  %v932_v37 = vcombine.low %v788_v31, %v852_v34  ;;  %v933_v21 = vcombine.high %v788_v31, %v852_v34 }
 0x2b4   : > { %v924_v38 = vrot.slane %v916_v33, %v2220_v18  ;;  %v931_v42 = vrot.slane %v917_v0, %v2220_v18  ;;  %v940_v43 = vrot.slane %v932_v37, %v2220_v18  ;;  %v947_v45 = vrot.slane %v933_v21, %v2220_v18 }
 0x2b5   : > { %v820_v35 = vpop.trf.xlu0 }
 0x2b6   : > { %v964_v44 = vcombine.low %v908_v15, %v924_v38  ;;  %v965_v54 = vcombine.high %v908_v15, %v924_v38  ;;  %v980_v55 = vcombine.low %v915_v48, %v931_v42  ;;  %v981_v1 = vcombine.high %v915_v48, %v931_v42 }
 0x2b8   : > { %v972_v52 = vrot.slane %v964_v44, %v2232_v24  ;;  %v979_v61 = vrot.slane %v965_v54, %v2232_v24  ;;  %v988_v63 = vrot.slane %v980_v55, %v2232_v24  ;;  %v995_v5 = vrot.slane %v981_v1, %v2232_v24 }
 0x2b9   : > { %v884_v39 = vpop.trf.xlu0 }
 0x2ba   : > { %v948_v41 = vcombine.low %v820_v35, %v884_v39  ;;  %v949_v16 = vcombine.high %v820_v35, %v884_v39 }
 0x2bc   : > { %v956_v46 = vrot.slane %v948_v41, %v2220_v18  ;;  %v963_v47 = vrot.slane %v949_v16, %v2220_v18 }
 0x2be   : > { %v996_v49 = vcombine.low %v940_v43, %v956_v46  ;;  %v997_v50 = vcombine.high %v940_v43, %v956_v46  ;;  %v1012_v51 = vcombine.low %v947_v45, %v963_v47  ;;  %v1013_v56 = vcombine.high %v947_v45, %v963_v47 }
 0x2c0   : > { %v1004_v53 = vrot.slane %v996_v49, %v2232_v24  ;;  %v1011_v59 = vrot.slane %v997_v50, %v2232_v24  ;;  %v1020_v60 = vrot.slane %v1012_v51, %v2232_v24  ;;  %v1027_v4 = vrot.slane %v1013_v56, %v2232_v24 }
 0x2c1   : > { %v492_v8 = vpop.permute.xlu1 %491 }
 0x2c2   : > { %v1029_v57 = vcombine.high %v972_v52, %v1004_v53  ;;  %v1028_v58 = vcombine.low %v972_v52, %v1004_v53  ;;  %v1030_v2 = vcombine.low %v979_v61, %v1011_v59  ;;  %v1032_v3 = vcombine.low %v988_v63, %v1020_v60 }
 0x2c3   : > { %v1031_v6 = vcombine.high %v979_v61, %v1011_v59  ;;  %v1034_v7 = vcombine.low %v995_v5, %v1027_v4  ;;  %v1033_v9 = vcombine.high %v988_v63, %v1020_v60  ;;  %v1035_v10 = vcombine.high %v995_v5, %v1027_v4 }
 0x2c4   : > { %1068 = vxpose.xlu0.b32.start.end [1/1] (short) (narrow) %v1029_v57, 8  ;;  %1036 = vxpose.xlu1.b32.start.end [1/1] (short) (narrow) %v1028_v58, 8  ;;  %v499_v11 = vcombine.low %v2264_v62, %v492_v8  ;;  %v500_v12 = vcombine.high %v2264_v62, %v492_v8 }
 0x2c5   : > { %v494_v13 = vpop.permute.xlu1 %493 }
 0x2c6   : > { %v507_v20 = vrot.slane %v499_v11, %v2220_v18  ;;  %v514_v22 = vrot.slane %v500_v12, %v2220_v18 }
 0x2c8   : > { %1100 = vxpose.xlu0.b32.start.end [1/1] (short) (narrow) %v1030_v2, 8  ;;  %1164 = vxpose.xlu1.b32.start.end [1/1] (short) (narrow) %v1032_v3, 8 }
 0x2cc   : > { %1132 = vxpose.xlu0.b32.start.end [1/1] (short) (narrow) %v1031_v6, 8  ;;  %1228 = vxpose.xlu1.b32.start.end [1/1] (short) (narrow) %v1034_v7, 8 }
 0x2d0   : > { %1196 = vxpose.xlu0.b32.start.end [1/1] (short) (narrow) %v1033_v9, 8 }
 0x2d4   : > { %1260 = vxpose.xlu0.b32.start.end [1/1] (short) (narrow) %v1035_v10, 8  ;;  %v490_v14 = vpop.permute.xlu0 %489 }
 0x2d5   : > { %v515_v17 = vcombine.low %v490_v14, %v494_v13  ;;  %v516_v19 = vcombine.high %v490_v14, %v494_v13 }
 0x2d7   : > { %v523_v23 = vrot.slane %v515_v17, %v2220_v18  ;;  %v530_v25 = vrot.slane %v516_v19, %v2220_v18 }
 0x2d9   : > { %v531_v26 = vcombine.low %v507_v20, %v523_v23  ;;  %v532_v27 = vcombine.high %v507_v20, %v523_v23  ;;  %v547_v28 = vcombine.low %v514_v22, %v530_v25  ;;  %v548_v29 = vcombine.high %v514_v22, %v530_v25 }
 0x2db   : > { %v539_v30 = vrot.slane %v531_v26, %v2232_v24  ;;  %v546_v62 = vrot.slane %v532_v27, %v2232_v24  ;;  %v555_v31 = vrot.slane %v547_v28, %v2232_v24  ;;  %v562_v32 = vrot.slane %v548_v29, %v2232_v24 }
 0x2dd   : > { %v1368_v33 = vcombine.low %v539_v30, %v546_v62  ;;  %v1680_v34 = vcombine.high %v539_v30, %v546_v62  ;;  %v1384_v35 = vcombine.low %v555_v31, %v562_v32  ;;  %v1681_v36 = vcombine.high %v555_v31, %v562_v32 }
 0x2df   : > { %v1375_v0 = vrot.slane %v1368_v33, %v2220_v18  ;;  %v1383_v37 = vrot.slane %v1680_v34, %v2220_v18  ;;  %v1391_v38 = vrot.slane %v1384_v35, %v2220_v18  ;;  %v1399_v21 = vrot.slane %v1681_v36, %v2220_v18 }
 0x2e1   : > { %v1400_v39 = vcombine.low %v1375_v0, %v1383_v37  ;;  %v1401_v40 = vcombine.high %v1375_v0, %v1383_v37  ;;  %v1416_v15 = vcombine.low %v1391_v38, %v1399_v21  ;;  %v1417_v41 = vcombine.high %v1391_v38, %v1399_v21 }
 0x2e3   : > { %v1408_v16 = vrot.slane %v1400_v39, %v2232_v24  ;;  %v1415_v42 = vrot.slane %v1401_v40, %v2232_v24  ;;  %v1424_v43 = vrot.slane %v1416_v15, %v2232_v24  ;;  %v1431_v44 = vrot.slane %v1417_v41, %v2232_v24 }
 0x2e5   : > { %v1432_v45 = vcombine.low %v1408_v16, %v1424_v43  ;;  %v1433_v46 = vcombine.high %v1408_v16, %v1424_v43  ;;  %v1434_v47 = vcombine.low %v1415_v42, %v1431_v44  ;;  %v1435_v48 = vcombine.high %v1415_v42, %v1431_v44 }
 0x2e7   : > { %v1436_v49 = vpack.c.bf16 %v1432_v45, %v1432_v45  ;;  %v1437_v50 = vpack.c.bf16 %v1433_v46, %v1433_v46  ;;  %v1438_v51 = vpack.c.bf16 %v1434_v47, %v1434_v47  ;;  %v1439_v52 = vpack.c.bf16 %v1435_v48, %v1435_v48 }
 0x2e8   : > { %1875 = shalt.err (!%p1872_p9)
}
 0x2e9   : > { %s1876_s14 = scalar_lea.hbm %s2325_s18, 256  ;;  %s1880_s9 = scalar_lea.hbm %s2478_s2, 512 }
 0x2ea   : > { %p1877_p1 = scmp.ne.s32.totalorder %s2325_s18, %s1876_s14  ;;  %p1881_p3 = scmp.lt.u32.totalorder %s2325_s18, %s2478_s2 }
 0x2eb   : > { %p1882_p4 = scmp.lt.u32.totalorder %s1880_s9, %s1876_s14  ;;  %p1884_p6 = scmp.lt.u32.totalorder %s1876_s14, %s2325_s18 }
 0x2ec   : > { %p1878_p2 = pnand %p1877_p1, %p2146_p10 }
 0x2ed   : > { %p1883_p13 = por %p1882_p4, %p1881_p3 }
 0x2ee   : > { %p1879_p7 = pneg %p1878_p2 }
 0x2ef   : > { %p1885_p8 = por %p1884_p6, %p1883_p13 }
 0x2f1   : > { %p1886_p12 = pnand %p1885_p8, %p1879_p7 }
 0x2f3   : > { %1889 = shalt.err (!%p1886_p12)
}
 0x2f4   : > { %s2024_s11 = smov 4   ;;  %s2358_s12 = scalar_lea.vmem [#allocation10], %s2251_s30 }
 0x2f5   : > { %1713 = dma.vmem_to_hbm [thread:$0]  (%p2146_p10), %s2328_s10, 256, %s2325_s18, %s1445_s5, %s2020_s26, %s2020_s26, %s2024_s11  }
 0x2f6   : > { %1440 = vst.msk [vmem:[%s2358_s12] sm:$0xf] %vm639_vm2, %v1436_v49  ;;  %1441 = vst.msk [vmem:[%s2358_s12 + $0x4] sm:$0xf] %vm639_vm2, %v1437_v50  ;;  %s1449_s28 = sand.u32 1, %s2083_s21   ;;  %s259_s18 = scalar_lea.vmem [#allocation8], %s2251_s30 }
 0x2f7   : > { %1442 = vst.msk [vmem:[%s2358_s12 + $0x8] sm:$0xf] %vm639_vm2, %v1438_v51  ;;  %1443 = vst.msk [vmem:[%s2358_s12 + $0xc] sm:$0xf] %vm639_vm2, %v1439_v52  ;;  %s1486_s10 = sshll.u32 %s259_s18, 4  ;;  %s1503_s5 = sshll.u32 %s2358_s12, 4  ;;  %s2385_s10 = int_to_ptr.vmem [resolvable:$true] %s1486_s10  ;;  %s2393_s5 = int_to_ptr.vmem [resolvable:$true] %s1503_s5 }
 0x2f8   : > { %s2383_s7 = scalar_lea.hbm %s2479_s3, %s2315_s13  ;;  %s2391_s9 = scalar_lea.hbm %s2480_s4, %s2315_s13 }
 0x2f9   : > { %s2399_s23 = scalar_lea.sflag [#allocation9], %s1449_s28  ;;  %s1890_s25 = scalar_lea.vmem %s2385_s10, 256 }
 0x2fa   : > { %p1891_p11 = scmp.ne.s32.totalorder %s2385_s10, %s1890_s25  ;;  %s2025_s12 = smov [#allocation8]  }
 0x2fb   : > { %s1894_s13 = sshll.u32 %s2025_s12, 4  ;;  %s1895_s13 = int_to_ptr.vmem [resolvable:$false] %s1894_s13 }
 0x2fc   : > { %p1892_p0 = pnand %p1891_p11, %p2146_p10  ;;  %s1896_s14 = scalar_lea.vmem %s1895_s13, 512 }
 0x2fd   : > { %p1897_p9 = scmp.lt.s32.totalorder %s2385_s10, %s1895_s13  ;;  %p1898_p1 = scmp.lt.s32.totalorder %s1896_s14, %s1890_s25 }
 0x2fe   : > { %p1893_p5 = pneg %p1892_p0 }
 0x2ff   : > { %p1899_p2 = por %p1898_p1, %p1897_p9 }
 0x301   : > { %p1900_p7 = pnand %p1899_p2, %p1893_p5 }
 0x344   : > { %v1084_v53 = vpop.trf.xlu0  ;;  %v1052_v54 = vpop.trf.xlu1 }
 0x348   : > { %v1116_v55 = vpop.trf.xlu0  ;;  %v1180_v56 = vpop.trf.xlu1 }
 0x349   : > { %v1292_v61 = vcombine.low %v1052_v54, %v1116_v55 }
 0x34b   : > { %v1299_v3 = vrot.slane %v1292_v61, %v2220_v18 }
 0x34c   : > { %v1148_v57 = vpop.trf.xlu0  ;;  %v1244_v59 = vpop.trf.xlu1 }
 0x34d   : > { %v1300_v58 = vcombine.low %v1084_v53, %v1148_v57  ;;  %v1308_v1 = vcombine.low %v1180_v56, %v1244_v59 }
 0x34f   : > { %v1307_v63 = vrot.slane %v1300_v58, %v2220_v18  ;;  %v1315_v7 = vrot.slane %v1308_v1, %v2220_v18 }
 0x350   : > { %v1212_v60 = vpop.trf.xlu0 }
 0x351   : > { %v1324_v5 = vcombine.low %v1299_v3, %v1307_v63  ;;  %v1325_v6 = vcombine.high %v1299_v3, %v1307_v63 }
 0x353   : > { %v1332_v11 = vrot.slane %v1324_v5, %v2232_v24  ;;  %v1339_v12 = vrot.slane %v1325_v6, %v2232_v24 }
 0x354   : > { %v1276_v2 = vpop.trf.xlu0 }
 0x355   : > { %v1316_v4 = vcombine.low %v1212_v60, %v1276_v2 }
 0x357   : > { %v1323_v8 = vrot.slane %v1316_v4, %v2220_v18 }
 0x359   : > { %v1340_v9 = vcombine.low %v1315_v7, %v1323_v8  ;;  %v1341_v10 = vcombine.high %v1315_v7, %v1323_v8 }
 0x35b   : > { %v1348_v13 = vrot.slane %v1340_v9, %v2232_v24  ;;  %v1355_v14 = vrot.slane %v1341_v10, %v2232_v24 }
 0x35d   : > { %v1356_v17 = vcombine.low %v1332_v11, %v1348_v13  ;;  %v1357_v19 = vcombine.high %v1332_v11, %v1348_v13  ;;  %v1358_v20 = vcombine.low %v1339_v12, %v1355_v14  ;;  %v1359_v22 = vcombine.high %v1339_v12, %v1355_v14 }
 0x35f   : > { %v1360_v18 = vpack.c.bf16 %v1356_v17, %v1356_v17  ;;  %v1361_v23 = vpack.c.bf16 %v1357_v19, %v1357_v19  ;;  %v1362_v25 = vpack.c.bf16 %v1358_v20, %v1358_v20  ;;  %v1363_v26 = vpack.c.bf16 %v1359_v22, %v1359_v22 }
 0x361   : > { %1364 = vst.msk [vmem:[%s259_s18] sm:$0xf] %vm639_vm2, %v1360_v18  ;;  %1365 = vst.msk [vmem:[%s259_s18 + $0x4] sm:$0xf] %vm639_vm2, %v1361_v23 }
 0x362   : > { %1366 = vst.msk [vmem:[%s259_s18 + $0x8] sm:$0xf] %vm639_vm2, %v1362_v25  ;;  %1367 = vst.msk [vmem:[%s259_s18 + $0xc] sm:$0xf] %vm639_vm2, %v1363_v26 }
 0x363   : > { %1903 = shalt.err (!%p1900_p7)
}
 0x364   : > { %s1904_s28 = scalar_lea.hbm %s2383_s7, 256  ;;  %s1908_s21 = scalar_lea.hbm %s2479_s3, 512 }
 0x365   : > { %p1905_p3 = scmp.ne.s32.totalorder %s2383_s7, %s1904_s28  ;;  %p1909_p6 = scmp.lt.u32.totalorder %s2383_s7, %s2479_s3 }
 0x366   : > { %p1910_p8 = scmp.lt.u32.totalorder %s1908_s21, %s1904_s28  ;;  %p1912_p11 = scmp.lt.u32.totalorder %s1904_s28, %s2383_s7 }
 0x367   : > { %p1906_p4 = pnand %p1905_p3, %p2146_p10 }
 0x368   : > { %p1911_p12 = por %p1910_p8, %p1909_p6 }
 0x369   : > { %p1907_p13 = pneg %p1906_p4 }
 0x36a   : > { %p1913_p0 = por %p1912_p11, %p1911_p12 }
 0x36c   : > { %p1914_p5 = pnand %p1913_p0, %p1907_p13 }
 0x36e   : > { %1917 = shalt.err (!%p1914_p5)
}
 0x36f   : > { %1714 = dma.vmem_to_hbm [thread:$0]  (%p2146_p10), %s2385_s10, 256, %s2383_s7, %s2399_s23, %s2020_s26, %s2020_s26, %s2024_s11  }
 0x370   : > { %s1918_s25 = scalar_lea.vmem %s2393_s5, 256  ;;  %s2026_s13 = smov [#allocation10]  }
 0x371   : > { %p1919_p9 = scmp.ne.s32.totalorder %s2393_s5, %s1918_s25  ;;  %s1922_s14 = sshll.u32 %s2026_s13, 4  ;;  %s1923_s14 = int_to_ptr.vmem [resolvable:$false] %s1922_s14 }
 0x372   : > { %s1924_s28 = scalar_lea.vmem %s1923_s14, 512  ;;  %p1925_p7 = scmp.lt.s32.totalorder %s2393_s5, %s1923_s14 }
 0x373   : > { %p1920_p1 = pnand %p1919_p9, %p2146_p10  ;;  %p1926_p3 = scmp.lt.s32.totalorder %s1924_s28, %s1918_s25 }
 0x375   : > { %p1921_p2 = pneg %p1920_p1  ;;  %p1927_p4 = por %p1926_p3, %p1925_p7 }
 0x377   : > { %p1928_p13 = pnand %p1927_p4, %p1921_p2 }
 0x379   : > { %1931 = shalt.err (!%p1928_p13)
}
 0x37a   : > { %s1932_s10 = scalar_lea.hbm %s2391_s9, 256  ;;  %s1936_s27 = scalar_lea.hbm %s2480_s4, 512 }
 0x37b   : > { %p1933_p6 = scmp.ne.s32.totalorder %s2391_s9, %s1932_s10  ;;  %p1937_p11 = scmp.lt.u32.totalorder %s2391_s9, %s2480_s4 }
 0x37c   : > { %p1938_p0 = scmp.lt.u32.totalorder %s1936_s27, %s1932_s10  ;;  %p1940_p9 = scmp.lt.u32.totalorder %s1932_s10, %s2391_s9 }
 0x37d   : > { %p1934_p8 = pnand %p1933_p6, %p2146_p10 }
 0x37e   : > { %p1939_p5 = por %p1938_p0, %p1937_p11 }
 0x37f   : > { %p1935_p12 = pneg %p1934_p8 }
 0x380   : > { %p1941_p1 = por %p1940_p9, %p1939_p5 }
 0x382   : > { %p1942_p2 = pnand %p1941_p1, %p1935_p12 }
 0x384   : > { %1945 = shalt.err (!%p1942_p2)
}
 0x385   : > { %1715 = dma.vmem_to_hbm [thread:$0]  (%p2146_p10), %s2393_s5, 256, %s2391_s9, %s2399_s23, %s2020_s26, %s2020_s26, %s2024_s11  }
 0x386 PF: > { %s1518_s12 = sand.u32 1, %s1988_s15   ;;  %p2496_p7 = scmp.ne.s32.totalorder %s2485_s24, 0 }
 0x387   : > { %p2497_p3 = scmp.ge.s32.totalorder %s2008_s20, 2  ;;  %s1519_s25 = scalar_lea.sflag [#allocation4], %s1518_s12 }
 0x389   : > { %p1728_p4 = pnand %p2497_p3, %p2496_p7 }
 0x38b   : > { %1979 = dma.done.wait (!%p1728_p4), %s1519_s25, 256  }
 0x38c   : > { %1981 = vsyncadd (!%p1728_p4), %s1519_s25, 4294967040  ;;  %s1527_s6 = sand.u32 1, %s1663_s22  }
 0x38d   : > { %s1528_s13 = scalar_lea.sflag [#allocation9], %s1527_s6 }
 0x38e   : > { %1983 = dma.done.wait (!%p1728_p4), %s1528_s13, 512  }
 0x38f   : > { %1985 = vsyncadd (!%p1728_p4), %s1528_s13, 4294966784  ;;  %s25_s20 = sadd.s32 1, %s2008_s20   ;;  %s2498_s15 = smov %s1992_s16 }
 0x390   : > { %p22_p10 = scmp.ge.s32.totalorder %s25_s20, 4   ;;  %s2499_s16 = smov %s1996_s17 }
 0x391   : > { %s2500_s17 = smov %s2155_s8  ;;  %s2501_s18 = smov %s2004_s19 }
 0x392   : > { %s2502_s19 = smov %s2504_s29  ;;  %24 = sbr.rel (!%p22_p10) target bundleno = 9 (0x9), region = 109 }
 0x399   :  { %1542 = vsyncpa [#allocation3], 1 }
 0x39a   :  { %1544 = vsyncpa [#allocation3 + $0x1], 1 }
 0x39b   :  { %1545 = vsyncpa [#allocation6], 1 }
 0x39c   :  { %1546 = vsyncpa [#allocation4], 1 }
 0x39d   :  { %1548 = vsyncpa [#allocation4 + $0x1], 1 }
 0x39e   :  { %1549 = vsyncpa [#allocation9], 1 }
 0x39f   :  { %1551 = vsyncpa [#allocation9 + $0x1], 1 }

</bundles_post_ra>
